<compile_context>
chip_gen: v7x
topology: tpu7x:2x2x1
jax: 0.10.0
libtpu: 0.0.40
codegen_flags: <defaults>
</compile_context>

<pallas_src>
import functools

import jax
import jax.numpy as jnp
from jax import lax
from jax.experimental import pallas as pl
from jax.experimental.pallas import tpu as pltpu

ALPHA = 1.0
GAMMA = 2.0          # gamma == 2 -> explicit square in the kernel
LANES = 128
SUBLANES = 8
ACC_ROWS_MAX = 64    # rows of the per-program resident partial-sum block


def _cdiv(a, b):
    return -(-a // b)


def _round_up(v, m):
    return ((v + m - 1) // m) * m


def _default_tm_max():
    """Rows per input block, per chip generation (1 row = 128 lanes)."""
    try:
        kind = jax.devices()[0].device_kind.lower()
    except Exception:
        return 2048
    if "v7" in kind or "7x" in kind:
        return 8192          # 4 MiB f32 / input block; 2 in x 2 bufs = 16 MiB VMEM
    if "v6" in kind:
        return 4096          # 2 MiB / input block
    return 2048              # v5e & older: 1 MiB, well under the 16 MiB scoped default


_TM_MAX = _default_tm_max()


def _choose_tiling(rows, tm_max):
    """Pick (tm, num_tiles, p_dim) with no clamped/duplicate tiles."""
    tm = min(tm_max, rows)
    num_tiles = _cdiv(rows, tm)
    if num_tiles >= 2 and num_tiles % 2 == 1:
        # Shrink tm slightly so the tile count is even and splits exactly
        # across the two-program parallel axis (avoids a duplicate-tile DMA
        # and the TensorCore imbalance it causes on v7x).
        nt2 = num_tiles + 1
        tm2 = _round_up(_cdiv(rows, nt2), SUBLANES)
        if _cdiv(rows, tm2) == nt2:
            tm, num_tiles = tm2, nt2
    p_dim = 2 if (num_tiles >= 2 and num_tiles % 2 == 0) else 1
    return tm, num_tiles, p_dim


def _focal_f32(x, y):
    """Per-element focal loss (alpha=1, gamma=2), numerically stable, f32."""
    e = jnp.exp(-jnp.abs(x))
    bce = jnp.maximum(x, 0.0) - x * y + jnp.log1p(e)   # BCEWithLogits, reduction='none'
    pt = jnp.exp(-bce)
    d = 1.0 - pt
    return ALPHA * (d * d) * bce                        # gamma == 2 -> explicit square


def _focal_kernel(x_ref, y_ref, o_ref, *, tiles_per_p, last_tile,
                  last_tile_rows, acc_rows):
    i = pl.program_id(1)                 # reduction axis over row tiles

    @pl.when(i == 0)
    def _():
        o_ref[...] = jnp.zeros_like(o_ref)

    x = x_ref[...].astype(jnp.float32)
    y = y_ref[...].astype(jnp.float32)
    focal = _focal_f32(x, y)
    # TODO(synk): if a bundle dump shows the EUP slot saturating (v7x/bf16),
    # break the exp->log1p->exp chain via pt = exp(x*y - relu(x)) / (1 + e).

    tm, lanes = focal.shape

    def accumulate(vals):
        # Wide vreg-shaped partial sums: tm//acc_rows independent add chains
        # into the resident (acc_rows, lanes) output block (VPU filler that
        # hides under the input DMA). Cross-lane reduce happens outside.
        o_ref[...] += vals.reshape(tm // acc_rows, acc_rows, lanes).sum(axis=0)

    if last_tile_rows == tm:
        # Aligned case: every tile is full, no masking anywhere.
        accumulate(focal)
    else:
        # Only the final (ragged) tile pays for the mask; garbage rows in the
        # partially-filled block are selected away before accumulation.
        t = pl.program_id(0) * tiles_per_p + i
        is_last = t == last_tile

        @pl.when(t != last_tile)
        def _():
            accumulate(focal)

        @pl.when(is_last)
        def _():
            row = lax.broadcasted_iota(jnp.int32, (tm, lanes), 0)
            accumulate(jnp.where(row < last_tile_rows, focal, 0.0))


@functools.partial(jax.jit, static_argnames=("tm_max",))
def binary_focal_loss(inputs, targets, *, tm_max=None):
    """Pallas TPU BinaryFocalLoss.forward (alpha=1, gamma=2, size_average=True)."""
    assert inputs.shape == targets.shape
    tm_max = _TM_MAX if tm_max is None else tm_max

    n_total = inputs.size                       # static under jit
    x_flat = inputs.reshape(-1)                 # native dtype (bf16 ok)
    y_flat = targets.reshape(-1)

    chunk = SUBLANES * LANES                    # 1024
    n_main = (n_total // chunk) * chunk         # aligned prefix (no pad copies)
    rows = n_main // LANES                      # multiple of 8

    total = jnp.zeros((), jnp.float32)

    if rows > 0:
        x2 = (x_flat if n_main == n_total else x_flat[:n_main]).reshape(rows, LANES)
        y2 = (y_flat if n_main == n_total else y_flat[:n_main]).reshape(rows, LANES)

        tm, num_tiles, p_dim = _choose_tiling(rows, tm_max)
        tiles_per_p = num_tiles // p_dim
        last_tile_rows = rows - (num_tiles - 1) * tm        # valid rows in last tile
        acc_rows = next(a for a in (ACC_ROWS_MAX, 32, 16, 8) if tm % a == 0)

        kernel = functools.partial(
            _focal_kernel, tiles_per_p=tiles_per_p, last_tile=num_tiles - 1,
            last_tile_rows=last_tile_rows, acc_rows=acc_rows)

        def in_map(p, i):
            return (p * tiles_per_p + i, 0)

        partials = pl.pallas_call(
            kernel,
            out_shape=jax.ShapeDtypeStruct((p_dim * acc_rows, LANES), jnp.float32),
            grid_spec=pltpu.PrefetchScalarGridSpec(
                num_scalar_prefetch=0,
                grid=(p_dim, tiles_per_p),
                in_specs=[
                    pl.BlockSpec((tm, LANES), in_map),
                    pl.BlockSpec((tm, LANES), in_map),
                ],
                out_specs=pl.BlockSpec((acc_rows, LANES), lambda p, i: (p, 0)),
            ),
            compiler_params=pltpu.CompilerParams(
                dimension_semantics=("parallel", "arbitrary"),
                vmem_limit_bytes=32 * 1024 * 1024,
            ),
        )(x2, y2)
        total = total + jnp.sum(partials)

    if n_main < n_total:
        # <=1023-element ragged tail: tiny plain-JAX fold (no full-array pad).
        xt = x_flat[n_main:].astype(jnp.float32)
        yt = y_flat[n_main:].astype(jnp.float32)
        total = total + jnp.sum(_focal_f32(xt, yt))

    return total * (1.0 / n_total)              # size_average=True -> mean


def _reference(inputs, targets):
    return jnp.mean(_focal_f32(inputs.astype(jnp.float32),
                               targets.astype(jnp.float32)))


if __name__ == "__main__":
    key = jax.random.PRNGKey(0)

    # Test A: segmentation-style logits NCHW, size a multiple of 1024
    # (aligned fast path, single tile).
    kx, ky, key = (*jax.random.split(key, 2), key)
    xa = jax.random.normal(kx, (2, 4, 16, 16), dtype=jnp.float32) * 2.0
    ya = (jax.random.uniform(ky, (2, 4, 16, 16)) > 0.5).astype(jnp.float32)
    la = binary_focal_loss(xa, ya)
    jax.block_until_ready(la)
    assert jnp.allclose(la, _reference(xa, ya), atol=1e-5, rtol=1e-5), (la, _reference(xa, ya))

    # Test B: unaligned size (1155 elements) -> prefix kernel + plain-JAX tail.
    kx, ky = jax.random.split(jax.random.PRNGKey(1))
    xb = jax.random.normal(kx, (3, 5, 7, 11), dtype=jnp.float32) * 2.0
    yb = (jax.random.uniform(ky, (3, 5, 7, 11)) > 0.5).astype(jnp.float32)
    lb = binary_focal_loss(xb, yb)
    jax.block_until_ready(lb)
    assert jnp.allclose(lb, _reference(xb, yb), atol=1e-5, rtol=1e-5), (lb, _reference(xb, yb))

    # Test C: force the multi-tile path (small tm_max): odd->even tile-count
    # adjustment, 2-wide parallel axis, ragged masked last tile, plus a tail.
    kx, ky = jax.random.split(jax.random.PRNGKey(2))
    xc = jax.random.normal(kx, (2, 4, 40, 33), dtype=jnp.float32) * 2.0
    yc = (jax.random.uniform(ky, (2, 4, 40, 33)) > 0.5).astype(jnp.float32)
    lc = binary_focal_loss(xc, yc, tm_max=32)
    jax.block_until_ready(lc)
    assert jnp.allclose(lc, _reference(xc, yc), atol=1e-5, rtol=1e-5), (lc, _reference(xc, yc))

    print("KERNEL_OK")
</pallas_src>

<mosaic_0001>
module attributes {stable_mosaic.version = 11 : i64} {
  func.func @_focal_kernel(%arg0: i32, %arg1: i32, %arg2: memref<16x128xf32, #tpu.memory_space<vmem>>, %arg3: memref<16x128xf32, #tpu.memory_space<vmem>>, %arg4: memref<16x128xf32, #tpu.memory_space<vmem>>) attributes {dimension_semantics = [#tpu.dimension_semantics<parallel>, #tpu.dimension_semantics<arbitrary>], iteration_bounds = array<i64: 1, 1>, scalar_prefetch = 0 : i64, scratch_operands = 0 : i64, tpu.core_type = #tpu.core_type<tc>, window_params = [{transform_indices = @transform_0, window_bounds = array<i64: 16, 128>}, {transform_indices = @transform_1, window_bounds = array<i64: 16, 128>}, {transform_indices = @transform_2, window_bounds = array<i64: 16, 128>}]} {
    %c0_i32 = arith.constant 0 : i32
    %0 = arith.cmpi eq, %arg1, %c0_i32 : i32
    %1 = arith.extui %0 : i1 to i32
    %c0_i32_0 = arith.constant 0 : i32
    %2 = arith.cmpi ne, %1, %c0_i32_0 : i32
    scf.if %2 {
      %cst_13 = arith.constant 0.000000e+00 : f32
      %29 = vector.broadcast %cst_13 : f32 to vector<16x128xf32>
      %c0_14 = arith.constant 0 : index
      %c0_15 = arith.constant 0 : index
      %30 = vector.load %arg4[%c0_14, %c0_15] : memref<16x128xf32, #tpu.memory_space<vmem>>, vector<16x128xf32>
      tpu.vector_store %arg4[%c0_14, %c0_15], %29 {strides = array<i32>} : memref<16x128xf32, #tpu.memory_space<vmem>>, vector<16x128xf32>,
    } else {
    }
    %c0 = arith.constant 0 : index
    %c0_1 = arith.constant 0 : index
    %3 = vector.load %arg2[%c0, %c0_1] : memref<16x128xf32, #tpu.memory_space<vmem>>, vector<16x128xf32>
    %c0_2 = arith.constant 0 : index
    %c0_3 = arith.constant 0 : index
    %4 = vector.load %arg3[%c0_2, %c0_3] : memref<16x128xf32, #tpu.memory_space<vmem>>, vector<16x128xf32>
    %5 = math.absf %3 : vector<16x128xf32>
    %cst = arith.constant 0.000000e+00 : f32
    %6 = vector.broadcast %cst : f32 to vector<16x128xf32>
    %7 = arith.subf %6, %5 : vector<16x128xf32>
    %8 = math.exp %7 : vector<16x128xf32>
    %cst_4 = arith.constant 0.000000e+00 : f32
    %9 = vector.broadcast %cst_4 : f32 to vector<16x128xf32>
    %10 = arith.maximumf %3, %9 : vector<16x128xf32>
    %11 = arith.mulf %3, %4 : vector<16x128xf32>
    %12 = arith.subf %10, %11 : vector<16x128xf32>
    %13 = math.log1p %8 : vector<16x128xf32>
    %14 = arith.addf %12, %13 : vector<16x128xf32>
    %cst_5 = arith.constant 0.000000e+00 : f32
    %15 = vector.broadcast %cst_5 : f32 to vector<16x128xf32>
    %16 = arith.subf %15, %14 : vector<16x128xf32>
    %17 = math.exp %16 : vector<16x128xf32>
    %cst_6 = arith.constant 1.000000e+00 : f32
    %18 = vector.broadcast %cst_6 : f32 to vector<16x128xf32>
    %19 = arith.subf %18, %17 : vector<16x128xf32>
    %20 = arith.mulf %19, %19 : vector<16x128xf32>
    %cst_7 = arith.constant 1.000000e+00 : f32
    %21 = vector.broadcast %cst_7 : f32 to vector<16x128xf32>
    %22 = arith.mulf %21, %20 : vector<16x128xf32>
    %23 = arith.mulf %22, %14 : vector<16x128xf32>
    %c0_8 = arith.constant 0 : index
    %c0_9 = arith.constant 0 : index
    %24 = vector.load %arg4[%c0_8, %c0_9] : memref<16x128xf32, #tpu.memory_space<vmem>>, vector<16x128xf32>
    %25 = vector.shape_cast %23 : vector<16x128xf32> to vector<1x16x128xf32>
    %cst_10 = arith.constant dense<0.000000e+00> : vector<16x128xf32>
    %26 = vector.multi_reduction <add>, %25, %cst_10 [0] : vector<1x16x128xf32> to vector<16x128xf32>
    %27 = arith.addf %24, %26 : vector<16x128xf32>
    %c0_11 = arith.constant 0 : index
    %c0_12 = arith.constant 0 : index
    %28 = vector.load %arg4[%c0_11, %c0_12] : memref<16x128xf32, #tpu.memory_space<vmem>>, vector<16x128xf32>
    tpu.vector_store %arg4[%c0_11, %c0_12], %27 {strides = array<i32>} : memref<16x128xf32, #tpu.memory_space<vmem>>, vector<16x128xf32>,
    return
  }
  func.func @transform_0(%arg0: i32, %arg1: i32) -> (i32, i32) {
    %c1_i32 = arith.constant 1 : i32
    %0 = arith.muli %arg0, %c1_i32 : i32
    %1 = arith.addi %0, %arg1 : i32
    %c0_i32 = arith.constant 0 : i32
    %c0_i32_0 = arith.constant 0 : i32
    return %1, %c0_i32 : i32, i32
  }
  func.func @transform_1(%arg0: i32, %arg1: i32) -> (i32, i32) {
    %c1_i32 = arith.constant 1 : i32
    %0 = arith.muli %arg0, %c1_i32 : i32
    %1 = arith.addi %0, %arg1 : i32
    %c0_i32 = arith.constant 0 : i32
    %c0_i32_0 = arith.constant 0 : i32
    return %1, %c0_i32 : i32, i32
  }
  func.func @transform_2(%arg0: i32, %arg1: i32) -> (i32, i32) {
    %c0_i32 = arith.constant 0 : i32
    %c0_i32_0 = arith.constant 0 : i32
    return %arg0, %c0_i32 : i32, i32
  }
}

</mosaic_0001>

<bundles_post_ra>
// kernel: binary_focal_loss.1
= control target key start
LH: loop header
LB: loop body
LE: loop exit
PB: predicated region body
PF: predicated region fallthrough
CT: control target
= control target key end

     0   :  { %s181_s0 = inlined_call_operand.vmem [shape: f32[16,128], index: 0, kind: input, shape index: {}]   ;;  %s182_s1 = inlined_call_operand.vmem [shape: f32[16,128], index: 1, kind: input, shape index: {}]   ;;  %s183_s2 = inlined_call_operand.vmem [shape: f32[16,128], index: 2, kind: output, shape index: {}]  }
   0x1   :  { %v61_v0 = vld [vmem:[%s181_s0] sm:$0xff]  ;;  %v62_v1 = vld [vmem:[%s181_s0 + $0x8] sm:$0xff] }
   0x2   :  { %v65_v2 = vand.u32 2147483647, %v61_v0  ;;  %v66_v3 = vand.u32 2147483647, %v62_v1  ;;  %v63_v14 = vld [vmem:[%s182_s1] sm:$0xff]  ;;  %v64_v15 = vld [vmem:[%s182_s1 + $0x8] sm:$0xff] }
   0x3   :  { %v73_v17 = vmax.f32 %v61_v0, 0.0  ;;  %v75_v18 = vmul.f32 %v63_v14, %v61_v0  ;;  %v74_v21 = vmax.f32 %v62_v1, 0.0  ;;  %v76_v22 = vmul.f32 %v64_v15, %v62_v1 }
   0x4   :  { %v67_v4 = vsub.f32 0.0, %v65_v2  ;;  %v68_v5 = vsub.f32 0.0, %v66_v3 }
   0x5   :  { %v77_v26 = vsub.f32 %v73_v17, %v75_v18  ;;  %v78_v30 = vsub.f32 %v74_v21, %v76_v22 }
   0x6   :  { %v69_v6 = vmul.f32 1.442695, %v67_v4  ;;  %v71_v7 = vmul.f32 1.442695, %v68_v5 }
   0x8   :  { %136 = vpow2.f32 %v69_v6 }
   0x9   :  { %138 = vpow2.f32 %v71_v7 }
  0x12   :  { %v137_v8 = vpop.eup %136 }
  0x13   :  { %v139_v9 = vpop.eup %138  ;;  %v79_v10 = vadd.f32 1.0, %v137_v8  ;;  %v82_v12 = vmul.f32 -0.5, %v137_v8  ;;  %v85_v19 = vand.u32 2147483647, %v137_v8 }
  0x14   :  { %v88_v11 = vadd.f32 1.0, %v139_v9  ;;  %v91_v13 = vmul.f32 -0.5, %v139_v9  ;;  %v94_v23 = vand.u32 2147483647, %v139_v9 }
  0x15   :  { %140 = vlog2.f32 %v79_v10  ;;  %v83_v16 = vadd.f32 1.0, %v82_v12  ;;  %vm86_vm0 = vcmp.lt.f32.partialorder %v85_v19, 0.0004427343 }
  0x16   :  { %142 = vlog2.f32 %v88_v11  ;;  %v92_v20 = vadd.f32 1.0, %v91_v13  ;;  %vm95_vm1 = vcmp.lt.f32.partialorder %v94_v23, 0.0004427343 }
  0x17   :  { %v84_v24 = vmul.f32 %v137_v8, %v83_v16 }
  0x18   :  { %v93_v27 = vmul.f32 %v139_v9, %v92_v20 }
  0x1f   :  { %v141_v25 = vpop.eup %140 }
  0x20   :  { %v143_v28 = vpop.eup %142  ;;  %v81_v29 = vmul.f32 0.6931472, %v141_v25 }
  0x21   :  { %v90_v31 = vmul.f32 0.6931472, %v143_v28 }
  0x22   :  { %v87_v32 = vsel %vm86_vm0, %v84_v24, %v81_v29 }
  0x23   :  { %v97_v33 = vadd.f32 %v87_v32, %v77_v26  ;;  %v96_v34 = vsel %vm95_vm1, %v93_v27, %v90_v31 }
  0x24   :  { %v98_v35 = vadd.f32 %v96_v34, %v78_v30 }
  0x25   :  { %v99_v36 = vsub.f32 0.0, %v97_v33 }
  0x26   :  { %v100_v37 = vsub.f32 0.0, %v98_v35 }
  0x27   :  { %v101_v38 = vmul.f32 1.442695, %v99_v36 }
  0x28   :  { %v103_v39 = vmul.f32 1.442695, %v100_v37 }
  0x29   :  { %144 = vpow2.f32 %v101_v38 }
  0x2a   :  { %146 = vpow2.f32 %v103_v39 }
  0x33   :  { %v145_v40 = vpop.eup %144 }
  0x34   :  { %v147_v41 = vpop.eup %146  ;;  %v105_v42 = vsub.f32 1.0, %v145_v40 }
  0x35   :  { %v106_v43 = vsub.f32 1.0, %v147_v41 }
  0x36   :  { %v107_v44 = vmul.f32 %v105_v42, %v105_v42 }
  0x37   :  { %v108_v45 = vmul.f32 %v106_v43, %v106_v43 }
  0x38   :  { %v109_v46 = vmul.f32 %v107_v44, %v97_v33 }
  0x39   :  { %v110_v47 = vmul.f32 %v108_v45, %v98_v35 }
  0x3a   :  { %117 = vst [vmem:[%s183_s2] sm:$0xff] %v109_v46 }
  0x3b   :  { %118 = vst [vmem:[%s183_s2 + $0x8] sm:$0xff] %v110_v47 }

</bundles_post_ra>
